<compile_context>
chip_gen: v7x
topology: tpu7x:2x2x1
jax: 0.10.0
libtpu: 0.0.40
codegen_flags: <defaults>
</compile_context>

<pallas_src>
import functools

import jax
import jax.numpy as jnp
from jax.experimental import pallas as pl
from jax.experimental.pallas import tpu as pltpu


def _round_up(x, m):
    return ((x + m - 1) // m) * m


def _vmem_capacity_bytes():
    """Per-core physical VMEM (generation-aware), with a conservative fallback."""
    try:
        cap = int(pltpu.get_tpu_info().vmem_capacity_bytes)
        if 16 * 1024 * 1024 <= cap <= 256 * 1024 * 1024:
            return cap
    except Exception:
        pass
    return 64 * 1024 * 1024  # v7x per-TC size: safe lower bound everywhere


def _choose_tile_p(hw, c, logit_itemsize, n, vmem_cap):
    """Pick the pixel (lane) tile and the inner lane-chunk.

    Size from the *padded* VMEM footprint (sublane padding for small C and
    narrow dtypes), double-buffered, against ~40% of physical VMEM, so blocks
    are multi-MiB without risking VMEM OOM on v7x (64 MiB/TC).
    """
    sublanes = {4: 8, 2: 16, 1: 32}.get(logit_itemsize, 8)
    c_pad = _round_up(c, sublanes)
    # Per-lane VMEM bytes of one buffer set: logits block (+ sublane padding),
    # labels block (pads to ~32 B/lane for any int dtype), f32 loss block.
    bytes_per_lane = c_pad * logit_itemsize + 32 + 32
    budget = int(vmem_cap * 0.4)                  # double-buffered pipeline buffers
    tile = budget // (2 * bytes_per_lane)
    tile = max(1024, (tile // 1024) * 1024)
    tile = min(tile, _round_up(hw, 128))
    # Keep >= 8 grid steps when there is enough work so the DMA pipeline stays
    # busy and both v7x TensorCores get a share of the 'parallel' grid.
    while tile > 1024 and n * pl.cdiv(hw, tile) < 8:
        tile = max(1024, ((tile // 2) // 1024) * 1024)
    for chunk in (1024, 512, 256, 128):
        if tile % chunk == 0:
            return tile, chunk
    return tile, 128


def _bce_kernel(logits_ref, labels_ref, loss_ref, stats_ref, *,
                ignore_index, loss_th, hw, chunk):
    # logits_ref: (1, C, TILE_P)  native dtype (upcast per-chunk to f32)
    # labels_ref: (1, 1, TILE_P)  int (native; widened per-chunk)
    # loss_ref:   (1, 1, TILE_P)  f32 lane-dense per-pixel loss
    # stats_ref:  (1, 2, 128)     f32 (row 0: masked sum, row 1: mask count)
    c = logits_ref.shape[1]
    tile_p = loss_ref.shape[-1]
    num_chunks = tile_p // chunk
    base = pl.program_id(1) * tile_p

    def body(i, carry):
        s_sum, s_cnt = carry
        off = pl.multiple_of(i * chunk, chunk)
        x = logits_ref[0, :, pl.ds(off, chunk)].astype(jnp.float32)   # (C, chunk)
        lbl = labels_ref[0, :, pl.ds(off, chunk)].astype(jnp.int32)   # (1, chunk)

        # Numerically stable CE; reuse xs = x - max for both LSE and the pick
        # (the max cancels): loss = log(sum(exp(xs))) - xs[label].
        m = jnp.max(x, axis=0, keepdims=True)                         # (1, chunk)
        xs = x - m
        lse = jnp.log(jnp.sum(jnp.exp(xs), axis=0, keepdims=True))
        cls = jax.lax.broadcasted_iota(jnp.int32, (c, chunk), 0)
        picked = jnp.sum(jnp.where(cls == lbl, xs, 0.0), axis=0, keepdims=True)
        loss = lse - picked                                            # (1, chunk)

        # PyTorch CrossEntropyLoss(reduction='none', ignore_index): ignored -> 0
        loss = jnp.where(lbl == ignore_index, 0.0, loss)
        # Pixels past the true H*W (ragged last block) must not leak; keep this
        # mask BEFORE the store and the stats reduction (OOB tail is garbage).
        pix = base + off + jax.lax.broadcasted_iota(jnp.int32, (1, chunk), 1)
        valid = pix < hw
        loss = jnp.where(valid, loss, 0.0)
        loss_ref[0, :, pl.ds(off, chunk)] = loss

        # Fused bootstrapping statistics (per-tile partials).
        sel = jnp.logical_and(valid, loss > loss_th)
        s_sum = s_sum + jnp.sum(jnp.where(sel, loss, 0.0), keepdims=True)
        s_cnt = s_cnt + jnp.sum(sel.astype(jnp.float32), keepdims=True)
        return s_sum, s_cnt

    zero = jnp.zeros((1, 1), jnp.float32)
    s_sum, s_cnt = jax.lax.fori_loop(0, num_chunks, body, (zero, zero))
    stats_ref[0, 0:1, :] = jnp.broadcast_to(s_sum, (1, 128))
    stats_ref[0, 1:2, :] = jnp.broadcast_to(s_cnt, (1, 128))


def per_pixel_ce_and_stats(logits_nchw, labels_nhw, *, ignore_index, loss_th,
                           tile_p=None):
    """Returns (per-pixel losses flat (N*H*W,), masked_sum, masked_count)."""
    N, C, H, W = logits_nchw.shape
    HW = H * W

    # Free layout changes only: no transpose, no padding, no HBM copies.
    x = logits_nchw.reshape(N, C, HW)
    lbl = labels_nhw.reshape(N, 1, HW)
    if (not jnp.issubdtype(lbl.dtype, jnp.integer)) or lbl.dtype.itemsize > 4:
        lbl = lbl.astype(jnp.int32)   # only exotic dtypes; ints stay native

    vmem_cap = _vmem_capacity_bytes()
    if tile_p is None:
        tile_p, chunk = _choose_tile_p(HW, C, x.dtype.itemsize, N, vmem_cap)
    else:
        chunk = next(cc for cc in (1024, 512, 256, 128) if tile_p % cc == 0)
    grid_p = pl.cdiv(HW, tile_p)
    total_tiles = N * grid_p

    kernel = functools.partial(_bce_kernel, ignore_index=ignore_index,
                               loss_th=float(loss_th), hw=HW, chunk=chunk)

    losses, stats = pl.pallas_call(
        kernel,
        out_shape=(jax.ShapeDtypeStruct((N, 1, HW), jnp.float32),
                   jax.ShapeDtypeStruct((total_tiles, 2, 128), jnp.float32)),
        grid_spec=pltpu.PrefetchScalarGridSpec(
            num_scalar_prefetch=0,
            grid=(N, grid_p),
            in_specs=[
                pl.BlockSpec((1, C, tile_p), lambda n, p: (n, 0, p)),
                pl.BlockSpec((1, 1, tile_p), lambda n, p: (n, 0, p)),
            ],
            out_specs=(
                pl.BlockSpec((1, 1, tile_p), lambda n, p: (n, 0, p)),
                pl.BlockSpec((1, 2, 128), lambda n, p: (n * grid_p + p, 0, 0)),
            ),
        ),
        compiler_params=pltpu.CompilerParams(
            dimension_semantics=("parallel", "parallel"),
            vmem_limit_bytes=int(min(vmem_cap * 3 // 4, 112 * 1024 * 1024))),
    )(x, lbl)

    losses = losses.reshape(-1)
    masked_sum = jnp.sum(stats[:, 0, 0])
    count = jnp.sum(stats[:, 1, 0])
    return losses, masked_sum, count


def bootstrapped_ce(logits_nchw, labels_nhw, *, min_K, loss_th,
                    ignore_index=255):
    losses, masked_sum, count = per_pixel_ce_and_stats(
        logits_nchw, labels_nhw, ignore_index=ignore_index, loss_th=loss_th)

    def _masked_mean(_):
        return masked_sum / jnp.maximum(count, 1.0)

    def _topk_mean(_):
        # TODO(synk): top_k has no clean Pallas equivalent; lax.top_k in plain JAX.
        vals, _ = jax.lax.top_k(losses, min_K)
        return jnp.mean(vals)

    # reference: `if sum(mask).item() > K` (strict).  lax.cond so the full-array
    # sort-based top_k only runs when the bootstrapping count fails.
    return jax.lax.cond(count > min_K, _masked_mean, _topk_mean, 0)


if __name__ == "__main__":
    N, C, H, W = 2, 4, 16, 16
    min_K, loss_th = 64, 0.5

    key = jax.random.PRNGKey(0)
    k1, k2 = jax.random.split(key)
    logits = jax.random.normal(k1, (N, C, H, W), dtype=jnp.float32)
    labels = jax.random.randint(k2, (N, H, W), 0, C, dtype=jnp.int32)
    # exercise ignore_index on a few pixels
    labels = labels.at[0, 0, :4].set(255)

    fn = jax.jit(functools.partial(bootstrapped_ce, min_K=min_K, loss_th=loss_th))
    out = jax.block_until_ready(fn(logits, labels))

    # plain-JAX reference for a correctness sanity check
    xr = jnp.transpose(logits, (0, 2, 3, 1)).reshape(-1, C)
    lr = labels.reshape(-1)
    lse = jax.nn.logsumexp(xr, axis=-1)
    picked = jnp.take_along_axis(
        xr, jnp.clip(lr, 0, C - 1)[:, None], axis=-1)[:, 0]
    ref_losses = jnp.where(lr == 255, 0.0, lse - picked)
    ref_mask = ref_losses > loss_th
    ref_cnt = jnp.sum(ref_mask)
    ref = jnp.where(
        ref_cnt > min_K,
        jnp.sum(jnp.where(ref_mask, ref_losses, 0.0))
        / jnp.maximum(ref_cnt, 1).astype(jnp.float32),
        jnp.mean(jax.lax.top_k(ref_losses, min_K)[0]))

    assert out.shape == () and bool(jnp.isfinite(out))
    assert bool(jnp.allclose(out, ref, atol=1e-3, rtol=1e-3))
    print("KERNEL_OK")
</pallas_src>

<mosaic_0001>
module attributes {stable_mosaic.version = 11 : i64} {
  func.func @_bce_kernel(%arg0: i32, %arg1: i32, %arg2: memref<1x4x256xf32, #tpu.memory_space<vmem>>, %arg3: memref<1x1x256xi32, #tpu.memory_space<vmem>>, %arg4: memref<1x1x256xf32, #tpu.memory_space<vmem>>, %arg5: memref<1x2x128xf32, #tpu.memory_space<vmem>>) attributes {dimension_semantics = [#tpu.dimension_semantics<parallel>, #tpu.dimension_semantics<parallel>], iteration_bounds = array<i64: 2, 1>, scalar_prefetch = 0 : i64, scratch_operands = 0 : i64, tpu.core_type = #tpu.core_type<tc>, window_params = [{transform_indices = @transform_0, window_bounds = array<i64: 1, 4, 256>}, {transform_indices = @transform_1, window_bounds = array<i64: 1, 1, 256>}, {transform_indices = @transform_2, window_bounds = array<i64: 1, 1, 256>}, {transform_indices = @transform_3, window_bounds = array<i64: 1, 2, 128>}]} {
    %c256_i32 = arith.constant 256 : i32
    %0 = arith.muli %arg1, %c256_i32 : i32
    %cst = arith.constant 0.000000e+00 : f32
    %1 = vector.broadcast %cst : f32 to vector<1x1xf32>
    %c0_i32 = arith.constant 0 : i32
    %c256_i32_0 = arith.constant 256 : i32
    %2 = arith.muli %c0_i32, %c256_i32_0 : i32
    %3 = tpu.assume_multiple %2, 256 : i32
    %c0 = arith.constant 0 : index
    %c0_1 = arith.constant 0 : index
    %4 = arith.index_cast %3 : i32 to index
    %5 = vector.load %arg2[%c0, %c0_1, %4] : memref<1x4x256xf32, #tpu.memory_space<vmem>>, vector<1x4x256xf32>
    %6 = vector.shape_cast %5 : vector<1x4x256xf32> to vector<4x256xf32>
    %c0_2 = arith.constant 0 : index
    %c0_3 = arith.constant 0 : index
    %7 = arith.index_cast %3 : i32 to index
    %8 = vector.load %arg3[%c0_2, %c0_3, %7] : memref<1x1x256xi32, #tpu.memory_space<vmem>>, vector<1x1x256xi32>
    %9 = vector.shape_cast %8 : vector<1x1x256xi32> to vector<1x256xi32>
    %cst_4 = arith.constant dense<0xFF800000> : vector<256xf32>
    %10 = vector.multi_reduction <maximumf>, %6, %cst_4 [0] : vector<4x256xf32> to vector<256xf32>
    %11 = vector.shape_cast %10 : vector<256xf32> to vector<1x256xf32>
    %12 = vector.broadcast %11 : vector<1x256xf32> to vector<4x256xf32>
    %13 = arith.subf %6, %12 : vector<4x256xf32>
    %14 = math.exp %13 : vector<4x256xf32>
    %cst_5 = arith.constant dense<0.000000e+00> : vector<256xf32>
    %15 = vector.multi_reduction <add>, %14, %cst_5 [0] : vector<4x256xf32> to vector<256xf32>
    %16 = vector.shape_cast %15 : vector<256xf32> to vector<1x256xf32>
    %17 = math.log %16 : vector<1x256xf32>
    %18 = tpu.iota {dimensions = array<i32: 0>} : vector<4x256xi32>
    %19 = vector.broadcast %9 : vector<1x256xi32> to vector<4x256xi32>
    %20 = arith.cmpi eq, %18, %19 : vector<4x256xi32>
    %cst_6 = arith.constant 0.000000e+00 : f32
    %21 = vector.broadcast %cst_6 : f32 to vector<4x256xf32>
    %22 = arith.select %20, %13, %21 : vector<4x256xi1>, vector<4x256xf32>
    %cst_7 = arith.constant dense<0.000000e+00> : vector<256xf32>
    %23 = vector.multi_reduction <add>, %22, %cst_7 [0] : vector<4x256xf32> to vector<256xf32>
    %24 = vector.shape_cast %23 : vector<256xf32> to vector<1x256xf32>
    %25 = arith.subf %17, %24 : vector<1x256xf32>
    %c255_i32 = arith.constant 255 : i32
    %26 = vector.broadcast %c255_i32 : i32 to vector<1x256xi32>
    %27 = arith.cmpi eq, %9, %26 : vector<1x256xi32>
    %cst_8 = arith.constant 0.000000e+00 : f32
    %28 = vector.broadcast %cst_8 : f32 to vector<1x256xf32>
    %29 = arith.select %27, %28, %25 : vector<1x256xi1>, vector<1x256xf32>
    %30 = arith.addi %0, %3 : i32
    %31 = tpu.iota {dimensions = array<i32: 1>} : vector<1x256xi32>
    %32 = vector.broadcast %30 : i32 to vector<1x256xi32>
    %33 = arith.addi %32, %31 : vector<1x256xi32>
    %c256_i32_9 = arith.constant 256 : i32
    %34 = vector.broadcast %c256_i32_9 : i32 to vector<1x256xi32>
    %35 = arith.cmpi slt, %33, %34 : vector<1x256xi32>
    %cst_10 = arith.constant 0.000000e+00 : f32
    %36 = vector.broadcast %cst_10 : f32 to vector<1x256xf32>
    %37 = arith.select %35, %29, %36 : vector<1x256xi1>, vector<1x256xf32>
    %c0_11 = arith.constant 0 : index
    %c0_12 = arith.constant 0 : index
    %38 = arith.index_cast %3 : i32 to index
    %39 = vector.load %arg4[%c0_11, %c0_12, %38] : memref<1x1x256xf32, #tpu.memory_space<vmem>>, vector<1x1x256xf32>
    %40 = vector.shape_cast %39 : vector<1x1x256xf32> to vector<1x256xf32>
    %41 = vector.shape_cast %37 : vector<1x256xf32> to vector<1x1x256xf32>
    tpu.vector_store %arg4[%c0_11, %c0_12, %38], %41 {strides = array<i32>} : memref<1x1x256xf32, #tpu.memory_space<vmem>>, vector<1x1x256xf32>,
    %cst_13 = arith.constant 5.000000e-01 : f32
    %42 = vector.broadcast %cst_13 : f32 to vector<1x256xf32>
    %43 = arith.cmpf ogt, %37, %42 : vector<1x256xf32>
    %44 = arith.andi %35, %43 : vector<1x256xi1>
    %cst_14 = arith.constant 0.000000e+00 : f32
    %45 = vector.broadcast %cst_14 : f32 to vector<1x256xf32>
    %46 = arith.select %44, %37, %45 : vector<1x256xi1>, vector<1x256xf32>
    %47 = vector.shape_cast %46 : vector<1x256xf32> to vector<1x1x256xf32>
    %cst_15 = arith.constant dense<0.000000e+00> : vector<1xf32>
    %48 = vector.multi_reduction <add>, %47, %cst_15 [1, 2] : vector<1x1x256xf32> to vector<1xf32>
    %49 = vector.shape_cast %48 : vector<1xf32> to vector<1x1x1xf32>
    %50 = vector.extract %49[0, 0, 0] : f32 from vector<1x1x1xf32>
    %51 = vector.broadcast %50 : f32 to vector<1x1xf32>
    %52 = arith.addf %1, %51 : vector<1x1xf32>
    %53 = arith.extui %44 : vector<1x256xi1> to vector<1x256xi32>
    %54 = arith.sitofp %53 : vector<1x256xi32> to vector<1x256xf32>
    %55 = vector.shape_cast %54 : vector<1x256xf32> to vector<1x1x256xf32>
    %cst_16 = arith.constant dense<0.000000e+00> : vector<1xf32>
    %56 = vector.multi_reduction <add>, %55, %cst_16 [1, 2] : vector<1x1x256xf32> to vector<1xf32>
    %57 = vector.shape_cast %56 : vector<1xf32> to vector<1x1x1xf32>
    %58 = vector.extract %57[0, 0, 0] : f32 from vector<1x1x1xf32>
    %59 = vector.broadcast %58 : f32 to vector<1x1xf32>
    %60 = arith.addf %1, %59 : vector<1x1xf32>
    %c1_i32 = arith.constant 1 : i32
    %61 = vector.shape_cast %52 : vector<1x1xf32> to vector<1x1xf32>
    %62 = vector.broadcast %61 : vector<1x1xf32> to vector<1x128xf32>
    %c0_17 = arith.constant 0 : index
    %c0_18 = arith.constant 0 : index
    %c0_19 = arith.constant 0 : index
    %63 = vector.load %arg5[%c0_17, %c0_18, %c0_19] : memref<1x2x128xf32, #tpu.memory_space<vmem>>, vector<1x1x128xf32>
    %64 = vector.shape_cast %63 : vector<1x1x128xf32> to vector<1x128xf32>
    %65 = vector.shape_cast %62 : vector<1x128xf32> to vector<1x1x128xf32>
    tpu.vector_store %arg5[%c0_17, %c0_18, %c0_19], %65 {strides = array<i32>} : memref<1x2x128xf32, #tpu.memory_space<vmem>>, vector<1x1x128xf32>,
    %66 = vector.shape_cast %60 : vector<1x1xf32> to vector<1x1xf32>
    %67 = vector.broadcast %66 : vector<1x1xf32> to vector<1x128xf32>
    %c0_20 = arith.constant 0 : index
    %c1 = arith.constant 1 : index
    %c0_21 = arith.constant 0 : index
    %68 = vector.load %arg5[%c0_20, %c1, %c0_21] : memref<1x2x128xf32, #tpu.memory_space<vmem>>, vector<1x1x128xf32>
    %69 = vector.shape_cast %68 : vector<1x1x128xf32> to vector<1x128xf32>
    %70 = vector.shape_cast %67 : vector<1x128xf32> to vector<1x1x128xf32>
    tpu.vector_store %arg5[%c0_20, %c1, %c0_21], %70 {strides = array<i32>} : memref<1x2x128xf32, #tpu.memory_space<vmem>>, vector<1x1x128xf32>,
    return
  }
  func.func @transform_0(%arg0: i32, %arg1: i32) -> (i32, i32, i32) {
    %c0_i32 = arith.constant 0 : i32
    %c0_i32_0 = arith.constant 0 : i32
    return %arg0, %c0_i32, %arg1 : i32, i32, i32
  }
  func.func @transform_1(%arg0: i32, %arg1: i32) -> (i32, i32, i32) {
    %c0_i32 = arith.constant 0 : i32
    %c0_i32_0 = arith.constant 0 : i32
    return %arg0, %c0_i32, %arg1 : i32, i32, i32
  }
  func.func @transform_2(%arg0: i32, %arg1: i32) -> (i32, i32, i32) {
    %c0_i32 = arith.constant 0 : i32
    %c0_i32_0 = arith.constant 0 : i32
    return %arg0, %c0_i32, %arg1 : i32, i32, i32
  }
  func.func @transform_3(%arg0: i32, %arg1: i32) -> (i32, i32, i32) {
    %c1_i32 = arith.constant 1 : i32
    %0 = arith.muli %arg0, %c1_i32 : i32
    %1 = arith.addi %0, %arg1 : i32
    %c0_i32 = arith.constant 0 : i32
    %c0_i32_0 = arith.constant 0 : i32
    %c0_i32_1 = arith.constant 0 : i32
    return %1, %c0_i32, %c0_i32_0 : i32, i32, i32
  }
}

</mosaic_0001>

<bundles_post_ra>
// kernel: bootstrapped_ce.1
= control target key start
LH: loop header
LB: loop body
LE: loop exit
PB: predicated region body
PF: predicated region fallthrough
CT: control target
= control target key end

     0   :  { %s673_s12 = smov 0   ;;  %s675_s13 = smov 0   ;;  %s736_s0 = inlined_call_operand.vmem [shape: f32[2,4,256], index: 0, kind: input, shape index: {}]   ;;  %s737_s1 = inlined_call_operand.vmem [shape: s32[2,1,256], index: 1, kind: input, shape index: {}]   ;;  %s738_s2 = inlined_call_operand.vmem [shape: f32[2,1,256], index: 2, kind: output, shape index: {0}]   ;;  %s739_s3 = inlined_call_operand.vmem [shape: f32[2,2,128], index: 3, kind: output, shape index: {1}]  }
   0x1   :  { %s677_s14 = smov 0  }
   0x2 LB: > { %s26_s15 = sadd.s32 1, %s645_s13  ;;  %p579_p0 = scmp.ge.s32.totalorder %s649_s14, 1  ;;  %s649_s14 = sphi %s677_s14, %s14_s14   ;;  %s645_s13 = sphi %s675_s13, %s741_s13   ;;  %s641_s12 = sphi %s673_s12, %s740_s12  }
   0x3   : > { %p28_p1 = scmp.ge.s32.totalorder %s26_s15, 2  ;;  %p179_p2 = scmp.lt.s32.totalorder %s649_s14, 3 }
   0x5   : > { %s743_s15 = smov (%p28_p1, %s26_s15), 0  ;;  %p180_p3 = pnand %p579_p0, %p179_p2 }
   0x6   : > { %p224_p4 = scmp.lt.s32.totalorder (!%p180_p3), %s641_s12, 1  ;;  %vm263_vm0 = vcmask (!%p180_p3), 1043456   ;;  %v306_v13 = vlaneseq (!%p180_p3)  ;;  %v651_v57 = vmov (!%p180_p3), 1966171168   ;;  %vm410_vm4 = vcmask (!%p180_p3), 1040384  }
   0x7   : > { %183 = sbr.rel (%p180_p3) target bundleno = 304 (0x130), region = 28  ;;  %v344_v58 = vunpack.c.l.s4 (!%p180_p3), %v651_v57 }
   0x8   : > { %v699_v17 = vshrl.u32 (!%p180_p3), %v306_v13, 7  ;;  %vm401_vm7 = vcmp.lt.s32.totalorder (!%p180_p3), %v306_v13, 256 }
   0x9   : > { %v345_v63 = vunpack.c.0.s8 (!%p180_p3), %v344_v58 }
   0xa   : > { %v310_v20 = vsub.s32 (!%p180_p3), 0, %v699_v17  ;;  %v314_v23 = vsub.s32 (!%p180_p3), 1, %v699_v17 }
   0xe   : > { %s745_s12 = smov (!%p224_p4, %s641_s12), 1 }
   0xf   : > { %s589_s16 = sshll.u32 %s745_s12, 3  ;;  %s696_s20 = sshll.u32 %s745_s12, 1 }
  0x10   : > { %s231_s19 = scalar_lea.vmem %s736_s0, %s589_s16  ;;  %s240_s23 = scalar_lea.vmem %s737_s1, %s696_s20 }
  0x11   : > { %v258_v0 = vld [vmem:[%s231_s19] sm:$0xff]  ;;  %s249_s26 = scalar_lea.vmem %s738_s2, %s696_s20  ;;  %s255_s29 = scalar_lea.vmem %s739_s3, %s696_s20 }
  0x12   : > { %v261_v1 = vcombine.high %v258_v0, %v258_v0  ;;  %v264_v2 = vsel %vm263_vm0, %v258_v0, -inf  ;;  %v259_v21 = vld [vmem:[%s240_s23] sm:$0x3] }
  0x13   : > { %v265_v3 = vrot.slane %v264_v2, 4  ;;  %v311_v24 = vrot.slane %v259_v21, %v310_v20  ;;  %v315_v25 = vrot.slane %v259_v21, %v314_v23  ;;  %vm339_vm3 = vcmp.eq.s32.totalorder %v259_v21, 255 }
  0x14   : > { %v271_v4 = vsel %vm263_vm0, %v261_v1, -inf }
  0x15   : > { %v266_v5 = vmax.f32 %v264_v2, %v265_v3  ;;  %v272_v6 = vrot.slane %v271_v4, 4  ;;  %vm316_vm1 = vcmp.eq.s32.totalorder %v699_v17, %v311_v24  ;;  %vm317_vm2 = vcmp.eq.s32.totalorder %v699_v17, %v315_v25 }
  0x17   : > { %v267_v7 = vrot.slane %v266_v5, 2  ;;  %v273_v8 = vmax.f32 %v271_v4, %v272_v6  ;;  %v348_v4 = vsub.s32 %v345_v63, %v699_v17 }
  0x19   : > { %v268_v9 = vmax.f32 %v266_v5, %v267_v7  ;;  %v274_v10 = vrot.slane %v273_v8, 2 }
  0x1b   : > { %v269_v11 = vrot.slane %v268_v9, 1  ;;  %v275_v12 = vmax.f32 %v273_v8, %v274_v10 }
  0x1d   : > { %v270_v14 = vmax.f32 %v268_v9, %v269_v11  ;;  %v276_v15 = vrot.slane %v275_v12, 1 }
  0x1f   : > { %v277_v16 = vmax.f32 %v275_v12, %v276_v15  ;;  %v652_v15 = vmov 0.0  }
  0x21   : > { %v280_v18 = vcombine.low %v270_v14, %v277_v16 }
  0x23   : > { %v282_v19 = vsub.f32 %v258_v0, %v280_v18 }
  0x25   : > { %v283_v22 = vmul.f32 1.442695, %v282_v19  ;;  %v319_v26 = vcombine.high %v282_v19, %v282_v19  ;;  %v321_v27 = vsel %vm316_vm1, %v282_v19, 0.0 }
  0x26   : > { %v323_v30 = vsel %vm263_vm0, %v321_v27, 0.0 }
  0x27   : > { %621 = vpow2.f32 %v283_v22  ;;  %v322_v28 = vsel %vm317_vm2, %v319_v26, 0.0  ;;  %v324_v36 = vrot.slane %v323_v30, 4 }
  0x28   : > { %v330_v34 = vsel %vm263_vm0, %v322_v28, 0.0 }
  0x29   : > { %v331_v39 = vrot.slane %v330_v34, 4  ;;  %v325_v42 = vadd.f32 %v324_v36, %v323_v30 }
  0x2b   : > { %v332_v45 = vadd.f32 %v331_v39, %v330_v34  ;;  %v326_v48 = vrot.slane %v325_v42, 2 }
  0x2d   : > { %v333_v51 = vrot.slane %v332_v45, 2  ;;  %v327_v53 = vadd.f32 %v326_v48, %v325_v42 }
  0x2f   : > { %v334_v54 = vadd.f32 %v333_v51, %v332_v45  ;;  %v328_v55 = vrot.slane %v327_v53, 1 }
  0x31   : > { %v622_v29 = vpop.eup %621  ;;  %v335_v56 = vrot.slane %v334_v54, 1  ;;  %v329_v59 = vadd.f32 %v328_v55, %v327_v53 }
  0x32   : > { %v286_v31 = vcombine.high %v622_v29, %v622_v29  ;;  %v288_v32 = vsel %vm263_vm0, %v622_v29, 0.0 }
  0x33   : > { %v289_v33 = vrot.slane %v288_v32, 4  ;;  %v336_v62 = vadd.f32 %v335_v56, %v334_v54 }
  0x34   : > { %v295_v35 = vsel %vm263_vm0, %v286_v31, 0.0 }
  0x35   : > { %v290_v37 = vadd.f32 %v289_v33, %v288_v32  ;;  %v296_v38 = vrot.slane %v295_v35, 4 }
  0x37   : > { %v291_v40 = vrot.slane %v290_v37, 2  ;;  %v297_v41 = vadd.f32 %v296_v38, %v295_v35 }
  0x39   : > { %v292_v43 = vadd.f32 %v291_v40, %v290_v37  ;;  %v298_v44 = vrot.slane %v297_v41, 2 }
  0x3b   : > { %v293_v46 = vrot.slane %v292_v43, 1  ;;  %v299_v47 = vadd.f32 %v298_v44, %v297_v41 }
  0x3d   : > { %v294_v49 = vadd.f32 %v293_v46, %v292_v43  ;;  %v300_v50 = vrot.slane %v299_v47, 1 }
  0x3f   : > { %v301_v52 = vadd.f32 %v300_v50, %v299_v47  ;;  %623 = vlog2.f32 %v294_v49 }
  0x41   : > { %625 = vlog2.f32 %v301_v52 }
  0x49   : > { %v624_v60 = vpop.eup %623 }
  0x4a   : > { %v303_v61 = vmul.f32 0.6931472, %v624_v60 }
  0x4b   : > { %v626_v0 = vpop.eup %625 }
  0x4c   : > { %v305_v1 = vmul.f32 0.6931472, %v626_v0  ;;  %v337_v2 = vsub.f32 %v303_v61, %v329_v59 }
  0x4e   : > { %v338_v3 = vsub.f32 %v305_v1, %v336_v62 }
  0x50   : > { %v342_v5 = vcombine.low %v337_v2, %v338_v3 }
  0x52   : > { %v349_v6 = vrot.slane %v342_v5, %v348_v4 }
  0x54   : > { %v356_v7 = vrot.slane %v349_v6, %v348_v4 }
  0x56   : > { %v358_v8 = vsel %vm339_vm3, 0.0, %v356_v7 }
  0x57   : > { %v372_v9 = vrot.slane %v358_v8, %v310_v20  ;;  %v376_v10 = vrot.slane %v358_v8, %v314_v23 }
  0x59   : > { %vm404_vm5 = vcmp.gt.f32.partialorder %v372_v9, 0.5  ;;  %vm405_vm6 = vcmp.gt.f32.partialorder %v376_v10, 0.5  ;;  %v383_v11 = vcombine.low %v372_v9, %v376_v10 }
  0x5a   : > { %v408_v12 = vsel %vm404_vm5, %v372_v9, 0.0  ;;  %v409_v14 = vsel %vm405_vm6, %v376_v10, 0.0  ;;  %v585_v16 = vsel %vm404_vm5, 1.0, %v652_v15  ;;  %v586_v18 = vsel %vm405_vm6, 1.0, %v652_v15 }
  0x5b   : > { %v411_v19 = vsel %vm410_vm4, %v408_v12, 0.0  ;;  %v412_v17 = vsel %vm410_vm4, %v409_v14, 0.0  ;;  %v390_v22 = vrot.slane %v383_v11, %v348_v4  ;;  %v429_v21 = vsel %vm410_vm4, %v585_v16, 0.0 }
  0x5c   : > { %v413_v20 = vadd.f32 %v412_v17, %v411_v19  ;;  %v430_v23 = vsel %vm410_vm4, %v586_v18, 0.0 }
  0x5d   : > { %v397_v24 = vrot.slane %v390_v22, %v348_v4  ;;  %v431_v25 = vadd.f32 %v430_v23, %v429_v21 }
  0x5e   : > { %414 = vadd.xlane.f32.xlu0 %v413_v20 }
  0x5f   : > { %403 = vst.msk [vmem:[%s249_s26] sm:$0x3] %vm401_vm7, %v397_v24 }
  0x62   : > { %432 = vadd.xlane.f32.xlu0 %v431_v25 }
  0xeb   : > { %v415_v26 = vpop.xlane.xlu0 %414 }
  0xec   : > { %v416_v27 = vrot.slane %v415_v26, 4 }
  0xee   : > { %v417_v28 = vadd.f32 %v416_v27, %v415_v26 }
  0xef   : > { %v433_v29 = vpop.xlane.xlu0 %432 }
  0xf0   : > { %v418_v30 = vrot.slane %v417_v28, 2  ;;  %v434_v31 = vrot.slane %v433_v29, 4 }
  0xf2   : > { %v435_v32 = vadd.f32 %v434_v31, %v433_v29  ;;  %v419_v33 = vadd.f32 %v418_v30, %v417_v28 }
  0xf4   : > { %v436_v34 = vrot.slane %v435_v32, 2  ;;  %v420_v35 = vrot.slane %v419_v33, 1 }
  0xf6   : > { %v437_v13 = vadd.f32 %v436_v34, %v435_v32  ;;  %v421_v36 = vadd.f32 %v420_v35, %v419_v33 }
  0xf8   : > { %590 = vpush %v421_v36  ;;  %v438_v37 = vrot.slane %v437_v13, 1 }
  0xfa   : > { %v439_v38 = vadd.f32 %v438_v37, %v437_v13 }
  0xfc   : > { %592 = vpush %v439_v38 }
 0x129   : > { %s591_s30 = spop %590 }
 0x12a   : > { %v423_v39 = vstv %s591_s30 }
 0x12b   : > { %443 = vst [vmem:[%s255_s29] sm:$0x1] %v423_v39 }
 0x12d   : > { %s593_s4 = spop %592 }
 0x12e   : > { %v441_v40 = vstv %s593_s4 }
 0x12f   : > { %444 = vst [vmem:[%s255_s29 + $0x1] sm:$0x1] %v441_v40 }
 0x130 PF: > { %s14_s14 = sadd.s32 1, %s649_s14   ;;  %s740_s12 = smov %s645_s13 }
 0x131   : > { %p11_p5 = scmp.ge.s32.totalorder %s14_s14, 4   ;;  %s741_s13 = smov %s743_s15 }
 0x133   :  { %13 = sbr.rel (!%p11_p5) target bundleno = 2 (0x2), region = 73 }

</bundles_post_ra>
